<compile_context>
chip_gen: v6e
topology: v6e:2x2x1
jax: 0.10.0
libtpu: 0.0.40
codegen_flags: <defaults>
</compile_context>

<pallas_src>
import functools

import jax
import jax.numpy as jnp
from jax.experimental import pallas as pl
from jax.experimental.pallas import tpu as pltpu


def _round_up(x, m):
    return ((x + m - 1) // m) * m


def treenode_kernel(l_ref, r_ref, wl_ref, wr_ref, b_ref, o_ref):
    # concat(left, right) @ W^T  ==  left @ W_left + right @ W_right
    # Two accumulating MXU dots, f32 accumulation, f32 bias + ReLU epilogue.
    cdt = wl_ref.dtype
    acc = jnp.dot(l_ref[...].astype(cdt), wl_ref[...],
                  preferred_element_type=jnp.float32)
    acc = acc + jnp.dot(r_ref[...].astype(cdt), wr_ref[...],
                        preferred_element_type=jnp.float32)
    acc = acc + b_ref[...]                       # bias broadcast over batch rows
    o_ref[...] = jnp.maximum(acc, 0.0).astype(o_ref.dtype)


def prepare_treenode_params(weight, bias, lane=128, compute_dtype=jnp.bfloat16):
    """One-time (per tree-node module) weight prep, hoisted out of the hot path.

    weight: [hidden, 2*input] (PyTorch Linear layout); bias: [hidden].
    Returns (w_left [in, hidden_pad], w_right [in, hidden_pad],
             b_padded [1, hidden_pad] f32, hidden_size).
    """
    hidden_size, two_in = weight.shape
    input_size = two_in // 2
    hidden_pad = _round_up(hidden_size, lane)
    w_t = jnp.transpose(weight)                                   # [2*in, hidden]
    w_t = jnp.pad(w_t, ((0, 0), (0, hidden_pad - hidden_size)))   # lane-dense N
    w_left = w_t[:input_size].astype(compute_dtype)               # [in, hidden_pad]
    w_right = w_t[input_size:].astype(compute_dtype)              # [in, hidden_pad]
    b_padded = jnp.pad(bias.astype(jnp.float32),
                       (0, hidden_pad - hidden_size)).reshape(1, hidden_pad)
    return w_left, w_right, b_padded, hidden_size


@functools.partial(jax.jit, static_argnames=("hidden_size", "slice_output"))
def treenode_forward(left, right, w_left, w_right, b_padded, hidden_size,
                     slice_output=True):
    """left, right: [B, input]; w_*: [input, hidden_pad]; b_padded: [1, hidden_pad]."""
    B, input_size = left.shape
    hidden_pad = w_left.shape[1]

    # Batch tile: large (amortize per-grid-step overhead), aligned to the
    # sublane pack of the activation dtype when B is small.
    pack = 16 if left.dtype == jnp.bfloat16 else 8
    tm = min(512, _round_up(max(B, 1), pack))
    grid_m = pl.cdiv(B, tm)

    # Hidden tile: lane-dense, capped so the weight never has to be fully
    # resident on small-VMEM parts (v7x: 64 MiB).
    tn = min(hidden_pad, 512)
    grid_n = pl.cdiv(hidden_pad, tn)

    act_b = jnp.dtype(left.dtype).itemsize
    w_b = jnp.dtype(w_left.dtype).itemsize
    out_b = jnp.dtype(left.dtype).itemsize

    cost = pl.CostEstimate(
        flops=2 * B * (2 * input_size) * hidden_pad,
        transcendentals=0,
        bytes_accessed=(2 * B * input_size * act_b
                        + 2 * input_size * hidden_pad * w_b
                        + hidden_pad * 4
                        + B * hidden_pad * out_b),
    )

    # When the hidden axis is untiled, the weight/bias block index is constant:
    # single-buffer them (halves resident-weight VMEM; matters on v5e's 16 MiB
    # scoped default).
    if grid_n == 1:
        def w_spec(shape, imap):
            return pl.BlockSpec(shape, imap, pipeline_mode=pl.Buffered(1))
    else:
        def w_spec(shape, imap):
            return pl.BlockSpec(shape, imap)

    vmem_needed = (2 * 2 * tm * input_size * act_b     # left/right, double-buffered
                   + 2 * 2 * input_size * tn * w_b     # weight halves
                   + 2 * tn * 4                        # bias
                   + 2 * tm * tn * out_b)              # output, double-buffered
    vmem_limit = int(min(max(32 << 20, 2 * vmem_needed), 56 << 20))

    out = pl.pallas_call(
        treenode_kernel,
        out_shape=jax.ShapeDtypeStruct((B, hidden_pad), left.dtype),
        grid_spec=pltpu.PrefetchScalarGridSpec(
            num_scalar_prefetch=0,
            grid=(grid_m, grid_n),
            in_specs=[
                pl.BlockSpec((tm, input_size), lambda i, j: (i, 0)),   # left
                pl.BlockSpec((tm, input_size), lambda i, j: (i, 0)),   # right
                w_spec((input_size, tn), lambda i, j: (0, j)),         # W_left
                w_spec((input_size, tn), lambda i, j: (0, j)),         # W_right
                w_spec((1, tn), lambda i, j: (0, j)),                  # bias
            ],
            out_specs=pl.BlockSpec((tm, tn), lambda i, j: (i, j)),
        ),
        compiler_params=pltpu.CompilerParams(
            dimension_semantics=("parallel", "parallel"),  # megacore sharding
            vmem_limit_bytes=vmem_limit,
        ),
        cost_estimate=cost,
    )(left, right, w_left, w_right, b_padded)

    # TODO(synk): across a whole tree, keep the lane-padded [B, hidden_pad]
    # layout between levels (slice_output=False) and batch sibling nodes into a
    # single pallas_call; slice only at the root.
    if slice_output and hidden_size != hidden_pad:
        out = out[:, :hidden_size]
    return out


if __name__ == "__main__":
    batch = 8
    input_size = 32
    hidden_size = 32

    key = jax.random.PRNGKey(0)
    k_l, k_r, k_w, k_b = jax.random.split(key, 4)

    left = jax.random.normal(k_l, (batch, input_size), dtype=jnp.float32)
    right = jax.random.normal(k_r, (batch, input_size), dtype=jnp.float32)

    # Deterministic PyTorch-style Linear init: U(-1/sqrt(fan_in), 1/sqrt(fan_in))
    fan_in = 2 * input_size
    bound = 1.0 / (fan_in ** 0.5)
    weight = jax.random.uniform(k_w, (hidden_size, 2 * input_size),
                                minval=-bound, maxval=bound, dtype=jnp.float32)
    bias = jax.random.uniform(k_b, (hidden_size,),
                              minval=-bound, maxval=bound, dtype=jnp.float32)

    # One-time weight prep (amortized across all tree-node forward calls).
    w_left, w_right, b_padded, hidden = prepare_treenode_params(weight, bias)

    out = treenode_forward(left, right, w_left, w_right, b_padded, hidden)
    out = jax.block_until_ready(out)

    # Reference applying the same bf16 rounding the kernel uses (bf16 products,
    # f32 accumulation), matmul at highest precision.
    def rounded(x):
        return x.astype(jnp.bfloat16).astype(jnp.float32)

    combined = jnp.concatenate([rounded(left), rounded(right)], axis=1)
    ref = jnp.maximum(
        jnp.matmul(combined, rounded(weight).T,
                   precision=jax.lax.Precision.HIGHEST) + bias, 0.0)

    assert out.shape == (batch, hidden_size)
    assert out.dtype == left.dtype
    assert jnp.allclose(out, ref, atol=1e-4, rtol=1e-4)

    print("KERNEL_OK")
</pallas_src>

<mosaic_0001>
module attributes {stable_mosaic.version = 11 : i64} {
  func.func @treenode_kernel(%arg0: i32, %arg1: i32, %arg2: memref<8x32xf32, #tpu.memory_space<vmem>>, %arg3: memref<8x32xf32, #tpu.memory_space<vmem>>, %arg4: memref<32x128xbf16, #tpu.memory_space<vmem>>, %arg5: memref<32x128xbf16, #tpu.memory_space<vmem>>, %arg6: memref<1x128xf32, #tpu.memory_space<vmem>>, %arg7: memref<8x128xf32, #tpu.memory_space<vmem>>) attributes {dimension_semantics = [#tpu.dimension_semantics<parallel>, #tpu.dimension_semantics<parallel>], iteration_bounds = array<i64: 1, 1>, scalar_prefetch = 0 : i64, scratch_operands = 0 : i64, tpu.core_type = #tpu.core_type<tc>, window_params = [{transform_indices = @transform_0, window_bounds = array<i64: 8, 32>}, {transform_indices = @transform_1, window_bounds = array<i64: 8, 32>}, {pipeline_mode = #tpu.pipeline_mode<synchronous>, transform_indices = @transform_2, window_bounds = array<i64: 32, 128>}, {pipeline_mode = #tpu.pipeline_mode<synchronous>, transform_indices = @transform_3, window_bounds = array<i64: 32, 128>}, {pipeline_mode = #tpu.pipeline_mode<synchronous>, transform_indices = @transform_4, window_bounds = array<i64: 1, 128>}, {transform_indices = @transform_5, window_bounds = array<i64: 8, 128>}]} {
    %c0 = arith.constant 0 : index
    %c0_0 = arith.constant 0 : index
    %0 = vector.load %arg2[%c0, %c0_0] : memref<8x32xf32, #tpu.memory_space<vmem>>, vector<8x32xf32>
    %1 = arith.truncf %0 : vector<8x32xf32> to vector<8x32xbf16>
    %c0_1 = arith.constant 0 : index
    %c0_2 = arith.constant 0 : index
    %2 = vector.load %arg4[%c0_1, %c0_2] : memref<32x128xbf16, #tpu.memory_space<vmem>>, vector<32x128xbf16>
    %cst = arith.constant dense<0.000000e+00> : vector<8x128xf32>
    %3 = tpu.matmul %1, %2, %cst {dimension_numbers = #tpu.dot_dimension_numbers<[1], [0], [0], [1], [0, 0, 1, 1], [], []>} : vector<8x32xbf16>, vector<32x128xbf16>, vector<8x128xf32> -> vector<8x128xf32>
    %c0_3 = arith.constant 0 : index
    %c0_4 = arith.constant 0 : index
    %4 = vector.load %arg3[%c0_3, %c0_4] : memref<8x32xf32, #tpu.memory_space<vmem>>, vector<8x32xf32>
    %5 = arith.truncf %4 : vector<8x32xf32> to vector<8x32xbf16>
    %c0_5 = arith.constant 0 : index
    %c0_6 = arith.constant 0 : index
    %6 = vector.load %arg5[%c0_5, %c0_6] : memref<32x128xbf16, #tpu.memory_space<vmem>>, vector<32x128xbf16>
    %cst_7 = arith.constant dense<0.000000e+00> : vector<8x128xf32>
    %7 = tpu.matmul %5, %6, %cst_7 {dimension_numbers = #tpu.dot_dimension_numbers<[1], [0], [0], [1], [0, 0, 1, 1], [], []>} : vector<8x32xbf16>, vector<32x128xbf16>, vector<8x128xf32> -> vector<8x128xf32>
    %8 = arith.addf %3, %7 : vector<8x128xf32>
    %c0_8 = arith.constant 0 : index
    %c0_9 = arith.constant 0 : index
    %9 = vector.load %arg6[%c0_8, %c0_9] : memref<1x128xf32, #tpu.memory_space<vmem>>, vector<1x128xf32>
    %10 = vector.broadcast %9 : vector<1x128xf32> to vector<8x128xf32>
    %11 = arith.addf %8, %10 : vector<8x128xf32>
    %cst_10 = arith.constant 0.000000e+00 : f32
    %12 = vector.broadcast %cst_10 : f32 to vector<8x128xf32>
    %13 = arith.maximumf %11, %12 : vector<8x128xf32>
    %c0_11 = arith.constant 0 : index
    %c0_12 = arith.constant 0 : index
    %14 = vector.load %arg7[%c0_11, %c0_12] : memref<8x128xf32, #tpu.memory_space<vmem>>, vector<8x128xf32>
    tpu.vector_store %arg7[%c0_11, %c0_12], %13 {strides = array<i32>} : memref<8x128xf32, #tpu.memory_space<vmem>>, vector<8x128xf32>,
    return
  }
  func.func @transform_0(%arg0: i32, %arg1: i32) -> (i32, i32) {
    %c0_i32 = arith.constant 0 : i32
    %c0_i32_0 = arith.constant 0 : i32
    return %arg0, %c0_i32 : i32, i32
  }
  func.func @transform_1(%arg0: i32, %arg1: i32) -> (i32, i32) {
    %c0_i32 = arith.constant 0 : i32
    %c0_i32_0 = arith.constant 0 : i32
    return %arg0, %c0_i32 : i32, i32
  }
  func.func @transform_2(%arg0: i32, %arg1: i32) -> (i32, i32) {
    %c0_i32 = arith.constant 0 : i32
    %c0_i32_0 = arith.constant 0 : i32
    return %c0_i32, %arg1 : i32, i32
  }
  func.func @transform_3(%arg0: i32, %arg1: i32) -> (i32, i32) {
    %c0_i32 = arith.constant 0 : i32
    %c0_i32_0 = arith.constant 0 : i32
    return %c0_i32, %arg1 : i32, i32
  }
  func.func @transform_4(%arg0: i32, %arg1: i32) -> (i32, i32) {
    %c0_i32 = arith.constant 0 : i32
    %c0_i32_0 = arith.constant 0 : i32
    return %c0_i32, %arg1 : i32, i32
  }
  func.func @transform_5(%arg0: i32, %arg1: i32) -> (i32, i32) {
    %c0_i32 = arith.constant 0 : i32
    return %arg0, %arg1 : i32, i32
  }
}

</mosaic_0001>

<bundles_post_ra>
// kernel: treenode_forward.1
= control target key start
LH: loop header
LB: loop body
LE: loop exit
PB: predicated region body
PF: predicated region fallthrough
CT: control target
= control target key end

     0   :  { %10 = vsyncpa [#allocation3], 0  ;;  %s430_s0 = inlined_call_operand.hbm [shape: f32[8,32], index: 0, kind: input, shape index: {}]   ;;  %s431_s1 = inlined_call_operand.hbm [shape: f32[8,32], index: 1, kind: input, shape index: {}]   ;;  %s432_s2 = inlined_call_operand.hbm [shape: bf16[32,128], index: 2, kind: input, shape index: {}]   ;;  %s433_s3 = inlined_call_operand.hbm [shape: bf16[32,128], index: 3, kind: input, shape index: {}]   ;;  %s434_s4 = inlined_call_operand.vmem [shape: f32[1,128], index: 4, kind: input, shape index: {}]   ;;  %s435_s5 = inlined_call_operand.hbm [shape: f32[8,128], index: 5, kind: output, shape index: {}]  }
   0x1   :  { %11 = vsyncpa [#allocation6], 0 }
   0x2   :  { %12 = vsyncpa [#allocation9], 0 }
   0x3   :  { %13 = vsyncpa [#allocation4], 0  ;;  %s373_s18 = smov [#allocation5]   ;;  %s374_s20 = smov [#allocation2]  }
   0x4   :  { %s30_s19 = sshll.u32 %s373_s18, 4  ;;  %s20_s21 = sshll.u32 %s374_s20, 4  ;;  %s31_s19 = int_to_ptr.vmem [resolvable:$true] %s30_s19  ;;  %s21_s21 = int_to_ptr.vmem [resolvable:$true] %s20_s21 }
   0x5   :  { %s273_s22 = scalar_lea.vmem %s31_s19, 128  ;;  %p278_p1 = scmp.lt.s32.totalorder %s31_s19, %s31_s19 }
   0x6   :  { %p274_p0 = scmp.ne.s32.totalorder %s31_s19, %s273_s22  ;;  %p279_p2 = scmp.lt.s32.totalorder %s273_s22, %s273_s22 }
   0x8   :  { %p280_p3 = por %p279_p2, %p278_p1 }
   0xa   :  { %p281_p4 = pnand %p280_p3, %p274_p0 }
   0xc   :  { %284 = shalt.err (!%p281_p4)
}
   0xd   :  { %33 = dma.hbm_to_vmem [thread:$0]  %s431_s1, 128, %s31_s19, [#allocation6]  }
   0xe   :  { %s293_s25 = scalar_lea.vmem %s21_s21, 128  ;;  %p298_p6 = scmp.lt.s32.totalorder %s21_s21, %s21_s21 }
   0xf   :  { %p294_p5 = scmp.ne.s32.totalorder %s21_s21, %s293_s25  ;;  %p299_p7 = scmp.lt.s32.totalorder %s293_s25, %s293_s25 }
  0x11   :  { %p300_p8 = por %p299_p7, %p298_p6 }
  0x13   :  { %p301_p9 = pnand %p300_p8, %p294_p5 }
  0x15   :  { %304 = shalt.err (!%p301_p9)
}
  0x16   :  { %23 = dma.hbm_to_vmem [thread:$0]  %s430_s0, 128, %s21_s21, [#allocation3]  }
  0x17   :  { %s375_s28 = smov [#allocation7]  }
  0x18   :  { %s39_s29 = sshll.u32 %s375_s28, 4  ;;  %s40_s29 = int_to_ptr.vmem [resolvable:$true] %s39_s29 }
  0x19   :  { %s313_s30 = scalar_lea.vmem %s40_s29, 256  ;;  %p318_p11 = scmp.lt.s32.totalorder %s40_s29, %s40_s29 }
  0x1a   :  { %p314_p10 = scmp.ne.s32.totalorder %s40_s29, %s313_s30  ;;  %p319_p12 = scmp.lt.s32.totalorder %s313_s30, %s313_s30 }
  0x1c   :  { %p320_p13 = por %p319_p12, %p318_p11 }
  0x1e   :  { %p321_p0 = pnand %p320_p13, %p314_p10 }
  0x20   :  { %324 = shalt.err (!%p321_p0)
}
  0x21   :  { %s376_s1 = smov 64   ;;  %s377_s6 = smov 4  }
  0x22   :  { %45 = dma.hbm_to_vmem [thread:$0]  %s432_s2, 256, %s40_s29, [#allocation6], %s376_s1, %s376_s1, %s377_s6  }
  0x23   :  { %s378_s9 = smov [#allocation8]  }
  0x24   :  { %s51_s10 = sshll.u32 %s378_s9, 4  ;;  %s52_s10 = int_to_ptr.vmem [resolvable:$true] %s51_s10 }
  0x25   :  { %s333_s0 = scalar_lea.vmem %s52_s10, 256  ;;  %p338_p2 = scmp.lt.s32.totalorder %s52_s10, %s52_s10 }
  0x26   :  { %p334_p1 = scmp.ne.s32.totalorder %s52_s10, %s333_s0  ;;  %p339_p3 = scmp.lt.s32.totalorder %s333_s0, %s333_s0 }
  0x28   :  { %p340_p4 = por %p339_p3, %p338_p2 }
  0x2a   :  { %p341_p5 = pnand %p340_p4, %p334_p1 }
  0x2c   :  { %344 = shalt.err (!%p341_p5)
}
  0x2d   :  { %57 = dma.hbm_to_vmem [thread:$0]  %s433_s3, 256, %s52_s10, [#allocation9], %s376_s1, %s376_s1, %s377_s6  }
  0x2e   :  { %365 = dma.done.wait [#allocation3], 128  }
  0x2f   :  { %366 = vsyncadd [#allocation3], 4294967168 }
  0x30   :  { %367 = dma.done.wait [#allocation6], 384  }
  0x31   :  { %368 = vsyncadd [#allocation6], 4294966912 }
  0x32   :  { %369 = dma.done.wait [#allocation9], 256  }
  0x33   :  { %370 = vsyncadd [#allocation9], 4294967040  ;;  %v379_v0 = vmov 0.0   ;;  %vm380_vm0 = vmmov 0   ;;  %v261_v1 = vld [vmem:[#allocation8 + $0x8] sm:$0xff]   ;;  %v262_v2 = vld [vmem:[#allocation7 + $0x8] sm:$0xff]  }
  0x34   :  { %236 = vmatprep.subr.bf16.mxu0 %v379_v0  ;;  %244 = vmatprep.subr.bf16.mxu1 %v379_v0  ;;  %v263_v3 = vld [vmem:[#allocation8] sm:$0xff]   ;;  %v264_v4 = vld [vmem:[#allocation7] sm:$0xff]   ;;  %v79_v5 = vld [vmem:[#allocation5] sm:$0xff]  ;;  %vm97_vm1 = vcmask 261120   ;;  %s381_s13 = smov [#allocation10]  }
  0x35   :  { %240 = vmatprep.mubr.msk.bf16.mxu0 %vm380_vm0, %v379_v0  ;;  %248 = vmatprep.mubr.msk.bf16.mxu1 %vm380_vm0, %v379_v0  ;;  %v73_v6 = vld [vmem:[#allocation2] sm:$0xff]  ;;  %v80_v7 = vpack.c.bf16 %v79_v5, %v79_v5  ;;  %s212_s14 = sshll.u32 %s381_s13, 4  ;;  %s213_s14 = int_to_ptr.vmem [resolvable:$true] %s212_s14 }
  0x36   :  { %237 = vmatpush3.bf16.msra.mxu0 %v261_v1  ;;  %245 = vmatpush3.bf16.msra.mxu1 %v262_v2  ;;  %v74_v8 = vpack.c.bf16 %v73_v6, %v73_v6  ;;  %v229_v11 = vld [vmem:[%s434_s4] ss:$0 sm:$0xff]  ;;  %s345_s15 = scalar_lea.vmem %s213_s14, 128  ;;  %p350_p7 = scmp.lt.s32.totalorder %s213_s14, %s213_s14 }
  0x37   :  { %238 = vmatprep.subr.bf16.mxu0 %v379_v0  ;;  %246 = vmatprep.subr.bf16.mxu1 %v379_v0  ;;  %p346_p6 = scmp.ne.s32.totalorder %s213_s14, %s345_s15  ;;  %p351_p8 = scmp.lt.s32.totalorder %s345_s15, %s345_s15 }
  0x39   :  { %p352_p9 = por %p351_p8, %p350_p7 }
  0x3a   :  { %239 = vmatpush3.bf16.msra.mxu0 %v263_v3  ;;  %247 = vmatpush3.bf16.msra.mxu1 %v264_v4 }
  0x3b   :  { %p353_p10 = pnand %p352_p9, %p346_p6 }
  0x3d   :  { %241 = vmatmul.mubr.msk.bf16.vlgmr.msra.gmra.mxu0 %vm97_vm1, %v80_v7  ;;  %249 = vmatmul.mubr.msk.bf16.vlgmr.msra.gmra.mxu1 %vm97_vm1, %v74_v8 }
  0xfd   :  { %v135_v9 = vpop.f32.mrf.mxu0  ;;  %v190_v10 = vpop.f32.mrf.mxu1 }
  0xfe   :  { %v191_v12 = vadd.f32 %v190_v10, %v135_v9 }
  0xff   :  { %v242_v13 = vpop.f32.mrf.mxu0  ;;  %v250_v14 = vpop.f32.mrf.mxu1 }
 0x100   :  { %v203_v15 = vadd.f32 %v229_v11, %v191_v12 }
 0x101   :  { %v138_v16 = vpop.f32.mrf.mxu0  ;;  %v193_v17 = vpop.f32.mrf.mxu1 }
 0x102   :  { %v204_v18 = vmax.f32 %v203_v15, 0.0 }
 0x103   :  { %v243_v19 = vpop.f32.mrf.mxu0  ;;  %v251_v20 = vpop.f32.mrf.mxu1 }
 0x104   :  { %205 = vst [vmem:[#allocation10] sm:$0xff] %v204_v18 }
 0x105   :  { %356 = shalt.err (!%p353_p10)
}
 0x106   :  { %215 = dma.vmem_to_hbm [thread:$0]  %s213_s14, 128, %s435_s5, [#allocation4]  }
 0x107   :  { %371 = dma.done.wait [#allocation4], 128  }
 0x108   :  { %372 = vsyncadd [#allocation4], 4294967168 }
 0x109   :  { %219 = vsyncpa [#allocation3], 1 }
 0x10a   :  { %220 = vsyncpa [#allocation6], 1 }
 0x10b   :  { %221 = vsyncpa [#allocation9], 1 }
 0x10c   :  { %222 = vsyncpa [#allocation4], 1 }

</bundles_post_ra>
